<compile_context>
chip_gen: v7x
topology: tpu7x:2x2x1
jax: 0.10.0
libtpu: 0.0.40
codegen_flags: <defaults>
</compile_context>

<pallas_src>
import functools

import jax
import jax.numpy as jnp
from jax.experimental import pallas as pl
from jax.experimental.pallas import tpu as pltpu


# ---------------------------------------------------------------------------
# helpers
# ---------------------------------------------------------------------------
def _vmem_budget_bytes():
    """Scoped-VMEM budget, generation aware (v5e/v6e: 128 MiB phys, v7x: 64 MiB/TC)."""
    cap = 64 * 1024 * 1024
    try:
        cap = int(pltpu.get_tpu_info().vmem_capacity_bytes)
    except Exception:
        pass
    # ~25% headroom for compiler temporaries / semaphores, hard cap at 96 MiB.
    return min((cap * 3) // 4, 96 * 1024 * 1024)


def _mlp_gate(context, w1_ref, b1_ref, g_ref, beta_ref, w2_ref, b2_ref):
    """LinearMlp (fc1 -> LayerNorm -> ReLU -> fc2) + sigmoid on a (1, C) context row."""
    h = jnp.dot(context, w1_ref[...].astype(jnp.float32),
                preferred_element_type=jnp.float32) + b1_ref[...].astype(jnp.float32)
    mu = jnp.mean(h, axis=-1, keepdims=True)
    d = h - mu
    var = jnp.mean(d * d, axis=-1, keepdims=True)
    h = d * jax.lax.rsqrt(var + 1e-5)
    h = h * g_ref[...].astype(jnp.float32) + beta_ref[...].astype(jnp.float32)
    h = jnp.maximum(h, 0.0)
    mlp = jnp.dot(h, w2_ref[...].astype(jnp.float32),
                  preferred_element_type=jnp.float32) + b2_ref[...].astype(jnp.float32)
    return jax.nn.sigmoid(mlp)


# ---------------------------------------------------------------------------
# Fast path: x resident in VMEM -> one fused kernel (1 read + 1 write of x)
# ---------------------------------------------------------------------------
def _fused_small_kernel(x_ref, wa_ref, ba_ref, w1_ref, b1_ref, g_ref, beta_ref,
                        w2_ref, b2_ref, o_ref):
    x = x_ref[...].astype(jnp.float32)                                   # (N, C)
    wa = wa_ref[...].astype(jnp.float32)                                 # (1, C)
    # logits via VPU multiply + lane reduce (avoid 1-wide MXU dot).
    logits = jnp.sum(x * wa, axis=-1, keepdims=True) + ba_ref[0, 0]      # (N, 1)
    m = jnp.max(logits, axis=0, keepdims=True)                           # (1, 1)
    p = jnp.exp(logits - m)                                              # (N, 1)
    l = jnp.sum(p, axis=0, keepdims=True)                                # (1, 1)
    context = jnp.sum(p * x, axis=0, keepdims=True) / l                  # (1, C)
    gate = _mlp_gate(context, w1_ref, b1_ref, g_ref, beta_ref, w2_ref, b2_ref)
    # multiply in x's own dtype (gate cast once)
    o_ref[...] = x_ref[...] * gate.astype(o_ref.dtype)


# ---------------------------------------------------------------------------
# Tiled path, kernel 1: per-core online-softmax context partials over row tiles
# grid = (2, tiles_per_core): axis 0 "parallel" (megacore on v7x), axis 1 "arbitrary"
# ---------------------------------------------------------------------------
def _ctx_partial_kernel(x_ref, wa_ref, ba_ref, m_ref, l_ref, ctx_ref,
                        *, n_rows, tile_rows, need_mask):
    c = pl.program_id(0)
    i = pl.program_id(1)

    @pl.when(i == 0)
    def _init():
        m_ref[...] = jnp.full_like(m_ref, -jnp.inf)
        l_ref[...] = jnp.zeros_like(l_ref)
        ctx_ref[...] = jnp.zeros_like(ctx_ref)

    x = x_ref[...].astype(jnp.float32)                                   # (tile_rows, C)
    wa = wa_ref[...].astype(jnp.float32)                                 # (1, C)

    if need_mask:
        row0 = (2 * i + c) * tile_rows
        rows = row0 + jax.lax.broadcasted_iota(jnp.int32, (tile_rows, 1), 0)
        valid = rows < n_rows
        # mask x itself so OOB garbage/NaN can't poison the context accumulation
        x = jnp.where(valid, x, 0.0)

    logits = jnp.sum(x * wa, axis=-1, keepdims=True) + ba_ref[0, 0]      # (tile_rows, 1)
    if need_mask:
        logits = jnp.where(valid, logits, -jnp.inf)

    m_prev = m_ref[0]                                                    # (1, 1)
    m_new = jnp.maximum(m_prev, jnp.max(logits, axis=0, keepdims=True))
    if need_mask:
        # an all-masked tile must leave the running state untouched (avoid inf-inf NaNs)
        scale = jnp.where(m_new == -jnp.inf, 0.0, jnp.exp(m_prev - m_new))
        p = jnp.where(valid, jnp.exp(logits - m_new), 0.0)
    else:
        scale = jnp.exp(m_prev - m_new)
        p = jnp.exp(logits - m_new)

    l_ref[0] = l_ref[0] * scale + jnp.sum(p, axis=0, keepdims=True)
    ctx_ref[0] = ctx_ref[0] * scale + jnp.sum(p * x, axis=0, keepdims=True)
    m_ref[0] = m_new


# ---------------------------------------------------------------------------
# Tiled path, kernel 2: merge the two softmax partials + tiny MLP -> gate (1, C)
# (weights only live in VMEM for this tiny kernel, never during the row loop)
# ---------------------------------------------------------------------------
def _gate_from_partials_kernel(m_ref, l_ref, ctx_ref, w1_ref, b1_ref, g_ref,
                               beta_ref, w2_ref, b2_ref, gate_ref):
    m0 = m_ref[0]                          # (1, 1)   core-0 partial (always has rows)
    m1 = m_ref[1]                          # (1, 1)   core-1 partial (may be empty)
    m = jnp.maximum(m0, m1)
    s0 = jnp.exp(m0 - m)
    s1 = jnp.where(m1 == -jnp.inf, 0.0, jnp.exp(m1 - m))
    l = l_ref[0] * s0 + l_ref[1] * s1
    ctx = ctx_ref[0] * s0 + ctx_ref[1] * s1                              # (1, C)
    context = ctx / l
    gate_ref[...] = _mlp_gate(context, w1_ref, b1_ref, g_ref, beta_ref,
                              w2_ref, b2_ref).astype(gate_ref.dtype)


# ---------------------------------------------------------------------------
# Tiled path, kernel 3: mem-bound row-tiled gating  out = x * gate
# ---------------------------------------------------------------------------
def _apply_gate_kernel(x_ref, gate_ref, o_ref):
    o_ref[...] = x_ref[...] * gate_ref[...].astype(o_ref.dtype)


# ---------------------------------------------------------------------------
# wrapper
# ---------------------------------------------------------------------------
def global_context(x, params, *, tile_rows=None, force_tiled=False):
    N, C = x.shape
    assert N >= 1 and C >= 1

    wa = params["wa"].reshape(1, C)
    ba = params["ba"].reshape(1, 1).astype(jnp.float32)
    w1 = params["w1_t"]
    b1 = params["b1"].reshape(1, C)
    g = params["ln_g"].reshape(1, C)
    beta = params["ln_b"].reshape(1, C)
    w2 = params["w2_t"]
    b2 = params["b2"].reshape(1, C)

    vmem_limit = _vmem_budget_bytes()

    def cparams(sem):
        return pltpu.CompilerParams(dimension_semantics=sem,
                                    vmem_limit_bytes=vmem_limit)

    smem_spec = pl.BlockSpec(memory_space=pltpu.MemorySpace.SMEM)

    # ---- resident-x fast path: single fused kernel ----
    x_io_bytes = N * C * x.dtype.itemsize
    x_f32_bytes = N * C * 4
    w_bytes = 2 * C * C * 4
    fast_est = 4 * x_io_bytes + 4 * x_f32_bytes + 2 * w_bytes + 64 * C * 4
    if (not force_tiled) and fast_est <= vmem_limit:
        def full(shape):
            return pl.BlockSpec(shape, lambda i: (0,) * len(shape))

        return pl.pallas_call(
            _fused_small_kernel,
            out_shape=jax.ShapeDtypeStruct((N, C), x.dtype),
            grid_spec=pltpu.PrefetchScalarGridSpec(
                num_scalar_prefetch=0,
                grid=(1,),
                in_specs=[full((N, C)), full((1, C)), smem_spec,
                          full((C, C)), full((1, C)),
                          full((1, C)), full((1, C)),
                          full((C, C)), full((1, C))],
                out_specs=full((N, C)),
            ),
            compiler_params=cparams(("arbitrary",)),
        )(x, wa, ba, w1, b1, g, beta, w2, b2)

    # ---- tiled path ----
    if tile_rows is None:
        # per-buffer cap ~ vmem_limit/8 (x-in + out, each double-buffered, in phase 3)
        tile_cap = vmem_limit // 8
        tile_rows = (tile_cap // (C * x.dtype.itemsize)) // 8 * 8
        tile_rows = max(8, min(2048, tile_rows))
    tile_rows = max(8, (tile_rows // 8) * 8)

    total_tiles = pl.cdiv(N, tile_rows)
    tiles_per_core = pl.cdiv(total_tiles, 2)          # leading size-2 parallel axis
    need_mask = (2 * tiles_per_core * tile_rows != N)

    # logical tile (2*i + c); clamp so "extra" tiles re-read a real tile (fully row-masked)
    def x1_map(c, i):
        return (jnp.minimum(2 * i + c, total_tiles - 1), 0)

    x_spec1 = pl.BlockSpec((tile_rows, C), x1_map)
    wa_spec = pl.BlockSpec((1, C), lambda c, i: (0, 0))
    part_s = pl.BlockSpec((1, 1, 1), lambda c, i: (c, 0, 0))
    part_c = pl.BlockSpec((1, 1, C), lambda c, i: (c, 0, 0))

    m_p, l_p, ctx_p = pl.pallas_call(
        functools.partial(_ctx_partial_kernel, n_rows=N, tile_rows=tile_rows,
                          need_mask=need_mask),
        out_shape=(jax.ShapeDtypeStruct((2, 1, 1), jnp.float32),
                   jax.ShapeDtypeStruct((2, 1, 1), jnp.float32),
                   jax.ShapeDtypeStruct((2, 1, C), jnp.float32)),
        grid_spec=pltpu.PrefetchScalarGridSpec(
            num_scalar_prefetch=0,
            grid=(2, tiles_per_core),
            in_specs=[x_spec1, wa_spec, smem_spec],
            out_specs=[part_s, part_s, part_c],
        ),
        compiler_params=cparams(("parallel", "arbitrary")),
    )(x, wa, ba)

    # TODO(synk): tile the (C, C) MLP weights for very large C so this kernel also
    # fits v7x's 64 MiB/TC VMEM; fine for typical GlobalContext channel counts.
    gate = pl.pallas_call(
        _gate_from_partials_kernel,
        out_shape=jax.ShapeDtypeStruct((1, C), jnp.float32),
        grid_spec=pltpu.PrefetchScalarGridSpec(
            num_scalar_prefetch=0,
            grid=(1,),
            in_specs=[pl.BlockSpec((2, 1, 1), lambda i: (0, 0, 0)),
                      pl.BlockSpec((2, 1, 1), lambda i: (0, 0, 0)),
                      pl.BlockSpec((2, 1, C), lambda i: (0, 0, 0)),
                      pl.BlockSpec((C, C), lambda i: (0, 0)),
                      pl.BlockSpec((1, C), lambda i: (0, 0)),
                      pl.BlockSpec((1, C), lambda i: (0, 0)),
                      pl.BlockSpec((1, C), lambda i: (0, 0)),
                      pl.BlockSpec((C, C), lambda i: (0, 0)),
                      pl.BlockSpec((1, C), lambda i: (0, 0))],
            out_specs=pl.BlockSpec((1, C), lambda i: (0, 0)),
        ),
        compiler_params=cparams(("arbitrary",)),
    )(m_p, l_p, ctx_p, w1, b1, g, beta, w2, b2)

    row_spec = pl.BlockSpec((tile_rows, C), lambda i: (i, 0))
    out = pl.pallas_call(
        _apply_gate_kernel,
        out_shape=jax.ShapeDtypeStruct((N, C), x.dtype),
        grid_spec=pltpu.PrefetchScalarGridSpec(
            num_scalar_prefetch=0,
            grid=(total_tiles,),
            in_specs=[row_spec, pl.BlockSpec((1, C), lambda i: (0, 0))],
            out_specs=row_spec,
        ),
        compiler_params=cparams(("parallel",)),
    )(x, gate)
    return out


# ---------------------------------------------------------------------------
# params init (matches the PyTorch module's reset_parameters / Linear defaults)
# ---------------------------------------------------------------------------
def init_params(key, C):
    ks = jax.random.split(key, 6)
    # linear_attn: kaiming_normal fan_in / relu -> std = sqrt(2 / C)
    wa = jax.random.normal(ks[0], (1, C), jnp.float32) * jnp.sqrt(2.0 / C)
    ba = jax.random.uniform(ks[1], (1, 1), jnp.float32, -1.0, 1.0) / jnp.sqrt(C)
    bound = 1.0 / jnp.sqrt(C)
    w1 = jax.random.uniform(ks[2], (C, C), jnp.float32, -bound, bound)
    b1 = jax.random.uniform(ks[3], (1, C), jnp.float32, -bound, bound)
    w2 = jax.random.uniform(ks[4], (C, C), jnp.float32, -bound, bound)
    b2 = jax.random.uniform(ks[5], (1, C), jnp.float32, -bound, bound)
    return {
        "wa": wa, "ba": ba,                      # Linear(C, 1)
        "w1_t": w1.T, "b1": b1,                  # fc1, pre-transposed (in, out)
        "ln_g": jnp.ones((1, C), jnp.float32),   # LayerNorm affine
        "ln_b": jnp.zeros((1, C), jnp.float32),
        "w2_t": w2.T, "b2": b2,                  # fc2, pre-transposed
    }


def reference(x, p):
    mm = lambda a, b: jnp.dot(a, b, precision=jax.lax.Precision.HIGHEST)
    logits = mm(x, p["wa"].T) + p["ba"][0, 0]
    attn = jax.nn.softmax(logits, axis=0)
    context = mm(x.T, attn).reshape(1, -1)
    h = mm(context, p["w1_t"]) + p["b1"]
    mu = h.mean(-1, keepdims=True)
    var = ((h - mu) ** 2).mean(-1, keepdims=True)
    h = (h - mu) / jnp.sqrt(var + 1e-5) * p["ln_g"] + p["ln_b"]
    h = jnp.maximum(h, 0.0)
    mlp_x = mm(h, p["w2_t"]) + p["b2"]
    return x * jax.nn.sigmoid(mlp_x)


if __name__ == "__main__":
    key = jax.random.PRNGKey(0)
    k1, k2, k3, k4 = jax.random.split(key, 4)

    def check(x, p, **kw):
        fn = jax.jit(functools.partial(global_context, **kw))
        out = jax.block_until_ready(fn(x, p))
        ref = reference(x, p)
        assert out.shape == x.shape and out.dtype == x.dtype
        assert jnp.allclose(out, ref, atol=3e-5, rtol=3e-5), f"mismatch ({kw})"

    # fast path, lane-aligned
    x = jax.random.normal(k1, (256, 128), jnp.float32)
    p = init_params(k2, 128)
    check(x, p)

    # fast path, unaligned N and C (no host padding anywhere)
    x2 = jax.random.normal(k3, (100, 96), jnp.float32)
    p2 = init_params(k4, 96)
    check(x2, p2)

    # tiled path: ragged last tile + row masking (even tile count)
    check(x2, p2, force_tiled=True, tile_rows=32)

    # tiled path: odd tile count -> clamped duplicate (fully masked) tile on core 1
    p3 = init_params(jax.random.PRNGKey(6), 128)
    x4 = jax.random.normal(jax.random.PRNGKey(7), (96, 128), jnp.float32)
    check(x4, p3, force_tiled=True, tile_rows=32)

    # tiled path: exact tiling (mask-free branch)
    x3 = jax.random.normal(jax.random.PRNGKey(5), (512, 128), jnp.float32)
    check(x3, p3, force_tiled=True, tile_rows=128)

    print("KERNEL_OK")
</pallas_src>

<mosaic_0001>
module attributes {stable_mosaic.version = 11 : i64} {
  func.func @_fused_small_kernel(%arg0: i32, %arg1: memref<256x128xf32, #tpu.memory_space<vmem>>, %arg2: memref<1x128xf32, #tpu.memory_space<vmem>>, %arg3: memref<1x1xf32, #tpu.memory_space<smem>>, %arg4: memref<128x128xf32, #tpu.memory_space<vmem>>, %arg5: memref<1x128xf32, #tpu.memory_space<vmem>>, %arg6: memref<1x128xf32, #tpu.memory_space<vmem>>, %arg7: memref<1x128xf32, #tpu.memory_space<vmem>>, %arg8: memref<128x128xf32, #tpu.memory_space<vmem>>, %arg9: memref<1x128xf32, #tpu.memory_space<vmem>>, %arg10: memref<256x128xf32, #tpu.memory_space<vmem>>) attributes {dimension_semantics = [#tpu.dimension_semantics<arbitrary>], iteration_bounds = array<i64: 1>, scalar_prefetch = 0 : i64, scratch_operands = 0 : i64, tpu.core_type = #tpu.core_type<tc>, window_params = [{pipeline_mode = #tpu.pipeline_mode<synchronous>, transform_indices = @transform_0, window_bounds = array<i64: 256, 128>}, {pipeline_mode = #tpu.pipeline_mode<synchronous>, transform_indices = @transform_1, window_bounds = array<i64: 1, 128>}, {transform_indices = @transform_2, window_bounds = array<i64: 1, 1>}, {pipeline_mode = #tpu.pipeline_mode<synchronous>, transform_indices = @transform_3, window_bounds = array<i64: 128, 128>}, {pipeline_mode = #tpu.pipeline_mode<synchronous>, transform_indices = @transform_4, window_bounds = array<i64: 1, 128>}, {pipeline_mode = #tpu.pipeline_mode<synchronous>, transform_indices = @transform_5, window_bounds = array<i64: 1, 128>}, {pipeline_mode = #tpu.pipeline_mode<synchronous>, transform_indices = @transform_6, window_bounds = array<i64: 1, 128>}, {pipeline_mode = #tpu.pipeline_mode<synchronous>, transform_indices = @transform_7, window_bounds = array<i64: 128, 128>}, {pipeline_mode = #tpu.pipeline_mode<synchronous>, transform_indices = @transform_8, window_bounds = array<i64: 1, 128>}, {pipeline_mode = #tpu.pipeline_mode<synchronous>, transform_indices = @transform_9, window_bounds = array<i64: 256, 128>}]} {
    %c0 = arith.constant 0 : index
    %c0_0 = arith.constant 0 : index
    %0 = vector.load %arg1[%c0, %c0_0] : memref<256x128xf32, #tpu.memory_space<vmem>>, vector<256x128xf32>
    %c0_1 = arith.constant 0 : index
    %c0_2 = arith.constant 0 : index
    %1 = vector.load %arg2[%c0_1, %c0_2] : memref<1x128xf32, #tpu.memory_space<vmem>>, vector<1x128xf32>
    %2 = vector.broadcast %1 : vector<1x128xf32> to vector<256x128xf32>
    %3 = arith.mulf %0, %2 : vector<256x128xf32>
    %cst = arith.constant dense<0.000000e+00> : vector<256xf32>
    %4 = vector.multi_reduction <add>, %3, %cst [1] : vector<256x128xf32> to vector<256xf32>
    %5 = vector.shape_cast %4 : vector<256xf32> to vector<256x1xf32>
    %c0_3 = arith.constant 0 : index
    %c0_4 = arith.constant 0 : index
    %6 = memref.load %arg3[%c0_3, %c0_4] : memref<1x1xf32, #tpu.memory_space<smem>>
    %7 = vector.broadcast %6 : f32 to vector<256x1xf32>
    %8 = arith.addf %5, %7 : vector<256x1xf32>
    %cst_5 = arith.constant dense<0xFF800000> : vector<1xf32>
    %9 = vector.multi_reduction <maximumf>, %8, %cst_5 [0] : vector<256x1xf32> to vector<1xf32>
    %10 = vector.shape_cast %9 : vector<1xf32> to vector<1x1xf32>
    %11 = vector.broadcast %10 : vector<1x1xf32> to vector<256x1xf32>
    %12 = arith.subf %8, %11 : vector<256x1xf32>
    %13 = math.exp %12 : vector<256x1xf32>
    %cst_6 = arith.constant dense<0.000000e+00> : vector<1xf32>
    %14 = vector.multi_reduction <add>, %13, %cst_6 [0] : vector<256x1xf32> to vector<1xf32>
    %15 = vector.shape_cast %14 : vector<1xf32> to vector<1x1xf32>
    %16 = vector.broadcast %13 : vector<256x1xf32> to vector<256x128xf32>
    %17 = arith.mulf %16, %0 : vector<256x128xf32>
    %cst_7 = arith.constant dense<0.000000e+00> : vector<128xf32>
    %18 = vector.multi_reduction <add>, %17, %cst_7 [0] : vector<256x128xf32> to vector<128xf32>
    %19 = vector.shape_cast %18 : vector<128xf32> to vector<1x128xf32>
    %20 = vector.broadcast %15 : vector<1x1xf32> to vector<1x128xf32>
    %21 = arith.divf %19, %20 : vector<1x128xf32>
    %c0_8 = arith.constant 0 : index
    %c0_9 = arith.constant 0 : index
    %22 = vector.load %arg4[%c0_8, %c0_9] : memref<128x128xf32, #tpu.memory_space<vmem>>, vector<128x128xf32>
    %cst_10 = arith.constant dense<0.000000e+00> : vector<1x128xf32>
    %23 = tpu.matmul %21, %22, %cst_10 {dimension_numbers = #tpu.dot_dimension_numbers<[1], [0], [0], [1], [0, 0, 1, 1], [], []>} : vector<1x128xf32>, vector<128x128xf32>, vector<1x128xf32> -> vector<1x128xf32>
    %c0_11 = arith.constant 0 : index
    %c0_12 = arith.constant 0 : index
    %24 = vector.load %arg5[%c0_11, %c0_12] : memref<1x128xf32, #tpu.memory_space<vmem>>, vector<1x128xf32>
    %25 = arith.addf %23, %24 : vector<1x128xf32>
    %cst_13 = arith.constant dense<0.000000e+00> : vector<1xf32>
    %26 = vector.multi_reduction <add>, %25, %cst_13 [1] : vector<1x128xf32> to vector<1xf32>
    %27 = vector.shape_cast %26 : vector<1xf32> to vector<1x1xf32>
    %cst_14 = arith.constant 1.280000e+02 : f32
    %28 = vector.broadcast %cst_14 : f32 to vector<1x1xf32>
    %29 = arith.divf %27, %28 : vector<1x1xf32>
    %30 = vector.broadcast %29 : vector<1x1xf32> to vector<1x128xf32>
    %31 = arith.subf %25, %30 : vector<1x128xf32>
    %32 = arith.mulf %31, %31 : vector<1x128xf32>
    %cst_15 = arith.constant dense<0.000000e+00> : vector<1xf32>
    %33 = vector.multi_reduction <add>, %32, %cst_15 [1] : vector<1x128xf32> to vector<1xf32>
    %34 = vector.shape_cast %33 : vector<1xf32> to vector<1x1xf32>
    %cst_16 = arith.constant 1.280000e+02 : f32
    %35 = vector.broadcast %cst_16 : f32 to vector<1x1xf32>
    %36 = arith.divf %34, %35 : vector<1x1xf32>
    %cst_17 = arith.constant 9.99999974E-6 : f32
    %37 = vector.broadcast %cst_17 : f32 to vector<1x1xf32>
    %38 = arith.addf %36, %37 : vector<1x1xf32>
    %39 = math.rsqrt %38 : vector<1x1xf32>
    %40 = vector.broadcast %39 : vector<1x1xf32> to vector<1x128xf32>
    %41 = arith.mulf %31, %40 : vector<1x128xf32>
    %c0_18 = arith.constant 0 : index
    %c0_19 = arith.constant 0 : index
    %42 = vector.load %arg6[%c0_18, %c0_19] : memref<1x128xf32, #tpu.memory_space<vmem>>, vector<1x128xf32>
    %43 = arith.mulf %41, %42 : vector<1x128xf32>
    %c0_20 = arith.constant 0 : index
    %c0_21 = arith.constant 0 : index
    %44 = vector.load %arg7[%c0_20, %c0_21] : memref<1x128xf32, #tpu.memory_space<vmem>>, vector<1x128xf32>
    %45 = arith.addf %43, %44 : vector<1x128xf32>
    %cst_22 = arith.constant 0.000000e+00 : f32
    %46 = vector.broadcast %cst_22 : f32 to vector<1x128xf32>
    %47 = arith.maximumf %45, %46 : vector<1x128xf32>
    %c0_23 = arith.constant 0 : index
    %c0_24 = arith.constant 0 : index
    %48 = vector.load %arg8[%c0_23, %c0_24] : memref<128x128xf32, #tpu.memory_space<vmem>>, vector<128x128xf32>
    %cst_25 = arith.constant dense<0.000000e+00> : vector<1x128xf32>
    %49 = tpu.matmul %47, %48, %cst_25 {dimension_numbers = #tpu.dot_dimension_numbers<[1], [0], [0], [1], [0, 0, 1, 1], [], []>} : vector<1x128xf32>, vector<128x128xf32>, vector<1x128xf32> -> vector<1x128xf32>
    %c0_26 = arith.constant 0 : index
    %c0_27 = arith.constant 0 : index
    %50 = vector.load %arg9[%c0_26, %c0_27] : memref<1x128xf32, #tpu.memory_space<vmem>>, vector<1x128xf32>
    %51 = arith.addf %49, %50 : vector<1x128xf32>
    %52 = arith.negf %51 : vector<1x128xf32>
    %53 = math.exp %52 : vector<1x128xf32>
    %cst_28 = arith.constant 1.000000e+00 : f32
    %54 = vector.broadcast %cst_28 : f32 to vector<1x128xf32>
    %55 = arith.addf %54, %53 : vector<1x128xf32>
    %56 = arith.divf %54, %55 : vector<1x128xf32>
    %c0_29 = arith.constant 0 : index
    %c0_30 = arith.constant 0 : index
    %57 = vector.load %arg1[%c0_29, %c0_30] : memref<256x128xf32, #tpu.memory_space<vmem>>, vector<256x128xf32>
    %58 = vector.broadcast %56 : vector<1x128xf32> to vector<256x128xf32>
    %59 = arith.mulf %57, %58 : vector<256x128xf32>
    %c0_31 = arith.constant 0 : index
    %c0_32 = arith.constant 0 : index
    %60 = vector.load %arg10[%c0_31, %c0_32] : memref<256x128xf32, #tpu.memory_space<vmem>>, vector<256x128xf32>
    tpu.vector_store %arg10[%c0_31, %c0_32], %59 {strides = array<i32>} : memref<256x128xf32, #tpu.memory_space<vmem>>, vector<256x128xf32>,
    return
  }
  func.func @transform_0(%arg0: i32) -> (i32, i32) {
    %c0_i32 = arith.constant 0 : i32
    %c0_i32_0 = arith.constant 0 : i32
    %c0_i32_1 = arith.constant 0 : i32
    return %c0_i32, %c0_i32_0 : i32, i32
  }
  func.func @transform_1(%arg0: i32) -> (i32, i32) {
    %c0_i32 = arith.constant 0 : i32
    %c0_i32_0 = arith.constant 0 : i32
    %c0_i32_1 = arith.constant 0 : i32
    return %c0_i32, %c0_i32_0 : i32, i32
  }
  func.func @transform_2(%arg0: i32) -> (i32, i32) {
    %c0_i32 = arith.constant 0 : i32
    %c0_i32_0 = arith.constant 0 : i32
    %c0_i32_1 = arith.constant 0 : i32
    return %c0_i32, %c0_i32_0 : i32, i32
  }
  func.func @transform_3(%arg0: i32) -> (i32, i32) {
    %c0_i32 = arith.constant 0 : i32
    %c0_i32_0 = arith.constant 0 : i32
    %c0_i32_1 = arith.constant 0 : i32
    return %c0_i32, %c0_i32_0 : i32, i32
  }
  func.func @transform_4(%arg0: i32) -> (i32, i32) {
    %c0_i32 = arith.constant 0 : i32
    %c0_i32_0 = arith.constant 0 : i32
    %c0_i32_1 = arith.constant 0 : i32
    return %c0_i32, %c0_i32_0 : i32, i32
  }
  func.func @transform_5(%arg0: i32) -> (i32, i32) {
    %c0_i32 = arith.constant 0 : i32
    %c0_i32_0 = arith.constant 0 : i32
    %c0_i32_1 = arith.constant 0 : i32
    return %c0_i32, %c0_i32_0 : i32, i32
  }
  func.func @transform_6(%arg0: i32) -> (i32, i32) {
    %c0_i32 = arith.constant 0 : i32
    %c0_i32_0 = arith.constant 0 : i32
    %c0_i32_1 = arith.constant 0 : i32
    return %c0_i32, %c0_i32_0 : i32, i32
  }
  func.func @transform_7(%arg0: i32) -> (i32, i32) {
    %c0_i32 = arith.constant 0 : i32
    %c0_i32_0 = arith.constant 0 : i32
    %c0_i32_1 = arith.constant 0 : i32
    return %c0_i32, %c0_i32_0 : i32, i32
  }
  func.func @transform_8(%arg0: i32) -> (i32, i32) {
    %c0_i32 = arith.constant 0 : i32
    %c0_i32_0 = arith.constant 0 : i32
    %c0_i32_1 = arith.constant 0 : i32
    return %c0_i32, %c0_i32_0 : i32, i32
  }
  func.func @transform_9(%arg0: i32) -> (i32, i32) {
    %c0_i32 = arith.constant 0 : i32
    %c0_i32_0 = arith.constant 0 : i32
    %c0_i32_1 = arith.constant 0 : i32
    return %c0_i32, %c0_i32_0 : i32, i32
  }
}

</mosaic_0001>

<bundles_post_ra>
// kernel: global_context.1
= control target key start
LH: loop header
LB: loop body
LE: loop exit
PB: predicated region body
PF: predicated region fallthrough
CT: control target
= control target key end

     0   :  { %15 = vsyncpa [#allocation4], 0  ;;  %s1701_s0 = inlined_call_operand.hbm [shape: f32[256,128], index: 0, kind: input, shape index: {}]   ;;  %s1702_s1 = inlined_call_operand.vmem [shape: f32[1,128], index: 1, kind: input, shape index: {}]   ;;  %s1703_s2 = inlined_call_operand.<no memory space> [shape: f32[1,1], index: 2, kind: input, shape index: {}]   ;;  %s1704_s3 = inlined_call_operand.hbm [shape: f32[128,128], index: 3, kind: input, shape index: {}]   ;;  %s1705_s4 = inlined_call_operand.vmem [shape: f32[1,128], index: 4, kind: input, shape index: {}]   ;;  %s1706_s5 = inlined_call_operand.vmem [shape: f32[1,128], index: 5, kind: input, shape index: {}]   ;;  %s1707_s6 = inlined_call_operand.vmem [shape: f32[1,128], index: 6, kind: input, shape index: {}]   ;;  %s1708_s7 = inlined_call_operand.hbm [shape: f32[128,128], index: 7, kind: input, shape index: {}]   ;;  %s1709_s8 = inlined_call_operand.vmem [shape: f32[1,128], index: 8, kind: input, shape index: {}]   ;;  %s1710_s9 = inlined_call_operand.hbm [shape: f32[256,128], index: 9, kind: output, shape index: {}]  }
   0x1   :  { %16 = vsyncpa [#allocation7], 0 }
   0x2   :  { %17 = vsyncpa [#allocation5], 0  ;;  %s1132_s30 = smov [#allocation6]   ;;  %s1133_s11 = smov [#allocation3]  }
   0x3   :  { %s39_s10 = sshll.u32 %s1132_s30, 4  ;;  %s23_s12 = sshll.u32 %s1133_s11, 4  ;;  %s40_s10 = int_to_ptr.vmem [resolvable:$true] %s39_s10  ;;  %s1191_s12 = int_to_ptr.vmem [resolvable:$true] %s23_s12 }
   0x4   :  { %s1038_s15 = scalar_lea.hbm %s1704_s3, 2048 }
   0x5   :  { %p1039_p0 = scmp.ne.s32.totalorder %s1704_s3, %s1038_s15  ;;  %p1042_p1 = scmp.lt.u32.totalorder %s1038_s15, %s1704_s3 }
   0x7   :  { %p1044_p2 = pnand %p1042_p1, %p1039_p0 }
   0x9   :  { %1047 = shalt.err (!%p1044_p2)
}
   0xa   :  { %s1048_s20 = scalar_lea.vmem %s40_s10, 2048  ;;  %p1053_p4 = scmp.lt.s32.totalorder %s40_s10, %s40_s10 }
   0xb   :  { %p1049_p3 = scmp.ne.s32.totalorder %s40_s10, %s1048_s20  ;;  %p1054_p5 = scmp.lt.s32.totalorder %s1048_s20, %s1048_s20 }
   0xd   :  { %p1055_p6 = por %p1054_p5, %p1053_p4 }
   0xf   :  { %p1056_p7 = pnand %p1055_p6, %p1049_p3 }
  0x11   :  { %1059 = shalt.err (!%p1056_p7)
}
  0x12   :  { %s1134_s21 = smov 128   ;;  %s1135_s22 = smov 8  }
  0x13   :  { %45 = dma.hbm_to_vmem [thread:$0]  %s1704_s3, 2048, %s40_s10, [#allocation7], %s1134_s21, %s1134_s21, %s1135_s22  }
  0x14   :  { %s1060_s27 = scalar_lea.hbm %s1701_s0, 4096 }
  0x15   :  { %p1061_p8 = scmp.ne.s32.totalorder %s1701_s0, %s1060_s27  ;;  %p1064_p9 = scmp.lt.u32.totalorder %s1060_s27, %s1701_s0 }
  0x17   :  { %p1066_p10 = pnand %p1064_p9, %p1061_p8 }
  0x19   :  { %1069 = shalt.err (!%p1066_p10)
}
  0x1a   :  { %s1070_s13 = scalar_lea.vmem %s1191_s12, 4096  ;;  %p1075_p12 = scmp.lt.s32.totalorder %s1191_s12, %s1191_s12 }
  0x1b   :  { %p1071_p11 = scmp.ne.s32.totalorder %s1191_s12, %s1070_s13  ;;  %p1076_p13 = scmp.lt.s32.totalorder %s1070_s13, %s1070_s13 }
  0x1d   :  { %p1077_p0 = por %p1076_p13, %p1075_p12 }
  0x1f   :  { %p1078_p1 = pnand %p1077_p0, %p1071_p11 }
  0x21   :  { %1081 = shalt.err (!%p1078_p1)
}
  0x22   :  { %29 = dma.hbm_to_vmem [thread:$0]  %s1701_s0, 4096, %s1191_s12, [#allocation4], %s1134_s21, %s1134_s21, %s1135_s22  }
  0x23   :  { %s1136_s14 = smov [#allocation8]   ;;  %s1082_s18 = scalar_lea.hbm %s1708_s7, 2048 }
  0x24   :  { %s57_s15 = sshll.u32 %s1136_s14, 4  ;;  %p1083_p2 = scmp.ne.s32.totalorder %s1708_s7, %s1082_s18  ;;  %s58_s15 = int_to_ptr.vmem [resolvable:$true] %s57_s15 }
  0x25   :  { %p1086_p3 = scmp.lt.u32.totalorder %s1082_s18, %s1708_s7 }
  0x27   :  { %p1088_p4 = pnand %p1086_p3, %p1083_p2 }
  0x29   :  { %1091 = shalt.err (!%p1088_p4)
}
  0x2a   :  { %s1092_s25 = scalar_lea.vmem %s58_s15, 2048  ;;  %p1097_p6 = scmp.lt.s32.totalorder %s58_s15, %s58_s15 }
  0x2b   :  { %p1093_p5 = scmp.ne.s32.totalorder %s58_s15, %s1092_s25  ;;  %p1098_p7 = scmp.lt.s32.totalorder %s1092_s25, %s1092_s25 }
  0x2d   :  { %p1099_p8 = por %p1098_p7, %p1097_p6 }
  0x2f   :  { %p1100_p9 = pnand %p1099_p8, %p1093_p5 }
  0x31   :  { %1103 = shalt.err (!%p1100_p9)
}
  0x32   :  { %63 = dma.hbm_to_vmem [thread:$0]  %s1708_s7, 2048, %s58_s15, [#allocation7], %s1134_s21, %s1134_s21, %s1135_s22  }
  0x33   :  { %1126 = dma.done.wait [#allocation4], 4096  }
  0x34   :  { %1127 = vsyncadd [#allocation4], 4294963200 }
  0x35   :  { %1128 = dma.done.wait [#allocation7], 4096  }
  0x36   :  { %1129 = vsyncadd [#allocation7], 4294963200  ;;  %v1243_v0 = vld [vmem:[#allocation3 + $0x10] sm:$0xff]  ;;  %v1248_v1 = vld [vmem:[%s1702_s1] ss:$0 sm:$0xff]  ;;  %vm1138_vm0 = vmmov 0  }
  0x37   :  { %v1250_v2 = vld [vmem:[#allocation3] sm:$0xff]  ;;  %v116_v3 = vmul.f32 %v1248_v1, %v1243_v0  ;;  %v1256_v5 = vld [vmem:[#allocation3 + $0x18] sm:$0xff]  ;;  %v1258_v6 = vld [vmem:[#allocation3 + $0x8] sm:$0xff]  ;;  %vm572_vm1 = vcmask 1040384  }
  0x38   :  { %v114_v4 = vmul.f32 %v1248_v1, %v1250_v2  ;;  %v117_v7 = vmul.f32 %v1248_v1, %v1256_v5  ;;  %v115_v8 = vmul.f32 %v1248_v1, %v1258_v6  ;;  %v1264_v9 = vld [vmem:[#allocation3 + $0x28] sm:$0xff]  ;;  %v1266_v10 = vld [vmem:[#allocation3 + $0x20] sm:$0xff]  ;;  %v1272_v13 = vld [vmem:[#allocation3 + $0x38] sm:$0xff] }
  0x39   :  { %150 = vadd.xlane.f32.xlu1 %v116_v3  ;;  %v119_v11 = vmul.f32 %v1248_v1, %v1264_v9  ;;  %v118_v12 = vmul.f32 %v1248_v1, %v1266_v10  ;;  %v1274_v14 = vld [vmem:[#allocation3 + $0x30] sm:$0xff]  ;;  %v121_v15 = vmul.f32 %v1248_v1, %v1272_v13  ;;  %v1280_v17 = vld [vmem:[#allocation3 + $0x48] sm:$0xff]  ;;  %v1282_v18 = vld [vmem:[#allocation3 + $0x40] sm:$0xff] }
  0x3a   :  { %146 = vadd.xlane.f32.xlu0 %v114_v4  ;;  %v120_v16 = vmul.f32 %v1248_v1, %v1274_v14  ;;  %v123_v19 = vmul.f32 %v1248_v1, %v1280_v17  ;;  %v122_v20 = vmul.f32 %v1248_v1, %v1282_v18  ;;  %v1288_v21 = vld [vmem:[#allocation3 + $0x58] sm:$0xff]  ;;  %v1290_v22 = vld [vmem:[#allocation3 + $0x50] sm:$0xff]  ;;  %v1296_v25 = vld [vmem:[#allocation3 + $0x68] sm:$0xff] }
  0x3b   :  { %v125_v23 = vmul.f32 %v1248_v1, %v1288_v21  ;;  %v124_v24 = vmul.f32 %v1248_v1, %v1290_v22  ;;  %v1298_v26 = vld [vmem:[#allocation3 + $0x60] sm:$0xff]  ;;  %v127_v27 = vmul.f32 %v1248_v1, %v1296_v25  ;;  %v1304_v29 = vld [vmem:[#allocation3 + $0x78] sm:$0xff]  ;;  %v1306_v30 = vld [vmem:[#allocation3 + $0x70] sm:$0xff] }
  0x3c   :  { %v126_v28 = vmul.f32 %v1248_v1, %v1298_v26  ;;  %1733 = vst [vmem:[#allocation13_spill] sm:$0xff] %v1304_v29  ;;  %1734 = vst [vmem:[#allocation14_spill] sm:$0xff] %v1306_v30  ;;  %v129_v31 = vmul.f32 %v1248_v1, %v1304_v29  ;;  %v128_v32 = vmul.f32 %v1248_v1, %v1306_v30  ;;  %v1312_v33 = vld [vmem:[#allocation3 + $0x88] sm:$0xff]  ;;  %v1314_v34 = vld [vmem:[#allocation3 + $0x80] sm:$0xff] }
  0x3d   :  { %152 = vadd.xlane.f32.xlu1 %v117_v7  ;;  %1735 = vst [vmem:[#allocation15_spill] sm:$0xff] %v1312_v33  ;;  %1736 = vst [vmem:[#allocation16_spill] sm:$0xff] %v1314_v34  ;;  %v131_v35 = vmul.f32 %v1248_v1, %v1312_v33  ;;  %v130_v36 = vmul.f32 %v1248_v1, %v1314_v34  ;;  %v1320_v37 = vld [vmem:[#allocation3 + $0x98] sm:$0xff]  ;;  %v1322_v38 = vld [vmem:[#allocation3 + $0x90] sm:$0xff] }
  0x3e   :  { %148 = vadd.xlane.f32.xlu0 %v115_v8  ;;  %1737 = vst [vmem:[#allocation17_spill] sm:$0xff] %v1320_v37  ;;  %1738 = vst [vmem:[#allocation18_spill] sm:$0xff] %v1322_v38  ;;  %v133_v39 = vmul.f32 %v1248_v1, %v1320_v37  ;;  %v132_v40 = vmul.f32 %v1248_v1, %v1322_v38  ;;  %v1328_v41 = vld [vmem:[#allocation3 + $0xa8] sm:$0xff]  ;;  %v1330_v42 = vld [vmem:[#allocation3 + $0xa0] sm:$0xff] }
  0x3f   :  { %1739 = vst [vmem:[#allocation19_spill] sm:$0xff] %v1328_v41  ;;  %1740 = vst [vmem:[#allocation20_spill] sm:$0xff] %v1330_v42  ;;  %v135_v43 = vmul.f32 %v1248_v1, %v1328_v41  ;;  %v134_v44 = vmul.f32 %v1248_v1, %v1330_v42  ;;  %v1336_v45 = vld [vmem:[#allocation3 + $0xb8] sm:$0xff]  ;;  %v1338_v46 = vld [vmem:[#allocation3 + $0xb0] sm:$0xff] }
  0x40   :  { %1741 = vst [vmem:[#allocation21_spill] sm:$0xff] %v1336_v45  ;;  %1742 = vst [vmem:[#allocation22_spill] sm:$0xff] %v1338_v46  ;;  %v137_v47 = vmul.f32 %v1248_v1, %v1336_v45  ;;  %v136_v48 = vmul.f32 %v1248_v1, %v1338_v46  ;;  %v1344_v49 = vld [vmem:[#allocation3 + $0xc8] sm:$0xff]  ;;  %v1346_v50 = vld [vmem:[#allocation3 + $0xc0] sm:$0xff] }
  0x41   :  { %156 = vadd.xlane.f32.xlu1 %v119_v11  ;;  %1743 = vst [vmem:[#allocation23_spill] sm:$0xff] %v1344_v49  ;;  %1744 = vst [vmem:[#allocation24_spill] sm:$0xff] %v1346_v50  ;;  %v139_v51 = vmul.f32 %v1248_v1, %v1344_v49  ;;  %v138_v52 = vmul.f32 %v1248_v1, %v1346_v50  ;;  %v1352_v53 = vld [vmem:[#allocation3 + $0xd8] sm:$0xff]  ;;  %v1354_v54 = vld [vmem:[#allocation3 + $0xd0] sm:$0xff] }
  0x42   :  { %154 = vadd.xlane.f32.xlu0 %v118_v12  ;;  %1745 = vst [vmem:[#allocation25_spill] sm:$0xff] %v1352_v53  ;;  %1746 = vst [vmem:[#allocation26_spill] sm:$0xff] %v1354_v54  ;;  %v141_v55 = vmul.f32 %v1248_v1, %v1352_v53  ;;  %v140_v56 = vmul.f32 %v1248_v1, %v1354_v54  ;;  %v1360_v57 = vld [vmem:[#allocation3 + $0xe8] sm:$0xff]  ;;  %v1362_v58 = vld [vmem:[#allocation3 + $0xe0] sm:$0xff] }
  0x43   :  { %1747 = vst [vmem:[#allocation27_spill] sm:$0xff] %v1360_v57  ;;  %1748 = vst [vmem:[#allocation28_spill] sm:$0xff] %v1362_v58  ;;  %v143_v59 = vmul.f32 %v1248_v1, %v1360_v57  ;;  %v142_v60 = vmul.f32 %v1248_v1, %v1362_v58  ;;  %v1368_v61 = vld [vmem:[#allocation3 + $0xf8] sm:$0xff]  ;;  %v1370_v62 = vld [vmem:[#allocation3 + $0xf0] sm:$0xff]  ;;  %v1751_v58 = vmov 0.0|0.0  }
  0x44   :  { %1749 = vst [vmem:[#allocation29_spill] sm:$0xff] %v1368_v61  ;;  %1750 = vst [vmem:[#allocation30_spill] sm:$0xff] %v1370_v62  ;;  %v145_v63 = vmul.f32 %v1248_v1, %v1368_v61  ;;  %v144_v3 = vmul.f32 %v1248_v1, %v1370_v62  ;;  %v490_v61 = vld [vmem:[#allocation6 + $0x28] sm:$0xff]  ;;  %v492_v53 = vld [vmem:[#allocation6 + $0x38] sm:$0xff] }
  0x45   :  { %160 = vadd.xlane.f32.xlu1 %v121_v15  ;;  %v493_v41 = vld [vmem:[#allocation6 + $0x40] sm:$0xff]  ;;  %v494_v42 = vld [vmem:[#allocation6 + $0x48] sm:$0xff] }
  0x46   :  { %158 = vadd.xlane.f32.xlu0 %v120_v16 }
  0x49   :  { %164 = vadd.xlane.f32.xlu1 %v123_v19 }
  0x4a   :  { %162 = vadd.xlane.f32.xlu0 %v122_v20 }
  0x4d   :  { %168 = vadd.xlane.f32.xlu1 %v125_v23 }
  0x4e   :  { %166 = vadd.xlane.f32.xlu0 %v124_v24 }
  0x51   :  { %172 = vadd.xlane.f32.xlu1 %v127_v27 }
  0x52   :  { %170 = vadd.xlane.f32.xlu0 %v126_v28 }
  0x55   :  { %176 = vadd.xlane.f32.xlu1 %v129_v31 }
  0x56   :  { %174 = vadd.xlane.f32.xlu0 %v128_v32 }
  0x59   :  { %180 = vadd.xlane.f32.xlu1 %v131_v35 }
  0x5a   :  { %178 = vadd.xlane.f32.xlu0 %v130_v36 }
  0x5d   :  { %184 = vadd.xlane.f32.xlu1 %v133_v39 }
  0x5e   :  { %182 = vadd.xlane.f32.xlu0 %v132_v40 }
  0x61   :  { %188 = vadd.xlane.f32.xlu1 %v135_v43  ;;  %v485_v43 = vld [vmem:[#allocation6] sm:$0xff] }
  0x62   :  { %186 = vadd.xlane.f32.xlu0 %v134_v44  ;;  %v486_v44 = vld [vmem:[#allocation6 + $0x8] sm:$0xff] }
  0x65   :  { %192 = vadd.xlane.f32.xlu1 %v137_v47  ;;  %v487_v47 = vld [vmem:[#allocation6 + $0x10] sm:$0xff] }
  0x66   :  { %190 = vadd.xlane.f32.xlu0 %v136_v48 }
  0x69   :  { %196 = vadd.xlane.f32.xlu1 %v139_v51 }
  0x6a   :  { %194 = vadd.xlane.f32.xlu0 %v138_v52  ;;  %v1714_v52 = vmov 0.0|0.0  }
  0x6b   :  { %877 = vmatprep.subr.bf16.mxu0 %v1714_v52  ;;  %901 = vmatprep.subr.bf16.mxu1 %v1714_v52 }
  0x6d   :  { %200 = vadd.xlane.f32.xlu1 %v141_v55  ;;  %v878_v55 = vpack.c.bf16 %v486_v44, %v485_v43 }
  0x6e   :  { %198 = vadd.xlane.f32.xlu0 %v140_v56  ;;  %v488_v56 = vld [vmem:[#allocation6 + $0x18] sm:$0xff] }
  0x6f   :  { %879 = vmatpush3.bf16.msra.mxu0 %v878_v55 }
  0x70   :  { %880 = vmatprep.subr.bf16.mxu0 %v1714_v52 }
  0x71   :  { %204 = vadd.xlane.f32.xlu1 %v143_v59  ;;  %v1139_v59 = vmov 0.0  }
  0x72   :  { %202 = vadd.xlane.f32.xlu0 %v142_v60  ;;  %839 = vmatprep.mubr.msk.f32.mxu0 %vm1138_vm0, %v1139_v59  ;;  %v881_v60 = vpack.c.bf16 %v488_v56, %v487_v47 }
  0x73   :  { %874 = vmatprep.mubr.msk.f32.mxu1 %vm1138_vm0, %v1139_v59 }
  0x74   :  { %882 = vmatpush3.bf16.msra.mxu0 %v881_v60 }
  0x75   :  { %208 = vadd.xlane.f32.xlu1 %v145_v63  ;;  %v1389_v63 = vstv %s1703_s2  ;;  %883 = vmatprep.subr.bf16.mxu0 %v1751_v58 }
  0x76   :  { %206 = vadd.xlane.f32.xlu0 %v144_v3  ;;  %v489_v3 = vld [vmem:[#allocation6 + $0x20] sm:$0xff] }
  0xc6   :  { %v151_v4 = vpop.xlane.xlu1 %150 }
  0xc7   :  { %v147_v7 = vpop.xlane.xlu0 %146 }
  0xc8   :  { %v1411_v52 = vadd.f32 %v1389_v63, %v147_v7 }
  0xca   :  { %v153_v8 = vpop.xlane.xlu1 %152 }
  0xcb   :  { %v149_v11 = vpop.xlane.xlu0 %148 }
  0xcc   :  { %v1402_v55 = vadd.f32 %v1389_v63, %v149_v11 }
  0xce   :  { %v157_v12 = vpop.xlane.xlu1 %156 }
  0xcf   :  { %v155_v15 = vpop.xlane.xlu0 %154  ;;  %v1393_v43 = vadd.f32 %v1389_v63, %v157_v12  ;;  %v884_v12 = vpack.c.bf16 %v490_v61, %v489_v3 }
  0xd0   :  { %v1396_v57 = vadd.f32 %v1389_v63, %v155_v15  ;;  %v1414_v15 = vadd.f32 %v1389_v63, %v153_v8 }
  0xd1   :  { %v245_v61 = vmax.f32 %v1402_v55, %v1393_v43  ;;  %885 = vmatpush3.bf16.msra.mxu0 %v884_v12 }
  0xd2   :  { %v161_v16 = vpop.xlane.xlu1 %160  ;;  %886 = vmatprep.subr.bf16.mxu0 %v1751_v58 }
  0xd3   :  { %v159_v19 = vpop.xlane.xlu0 %158  ;;  %v1399_v47 = vadd.f32 %v1389_v63, %v161_v16 }
  0xd4   :  { %v1405_v56 = vadd.f32 %v1389_v63, %v159_v19  ;;  %v491_v19 = vld [vmem:[#allocation6 + $0x30] sm:$0xff] }
  0xd5   :  { %v247_v3 = vmax.f32 %v1414_v15, %v1399_v47  ;;  %v887_v50 = vpack.c.bf16 %v492_v53, %v491_v19 }
  0xd6   :  { %v165_v20 = vpop.xlane.xlu1 %164 }
  0xd7   :  { %v163_v23 = vpop.xlane.xlu0 %162  ;;  %v1408_v59 = vadd.f32 %v1389_v63, %v165_v20  ;;  %v1424_v20 = vadd.f32 %v1389_v63, %v151_v4  ;;  %888 = vmatpush3.bf16.msra.mxu0 %v887_v50 }
  0xd8   :  { %v1417_v16 = vadd.f32 %v1389_v63, %v163_v23  ;;  %889 = vmatprep.subr.bf16.mxu0 %v1751_v58 }
  0xda   :  { %v169_v24 = vpop.xlane.xlu1 %168 }
  0xdb   :  { %v167_v27 = vpop.xlane.xlu0 %166  ;;  %v1420_v11 = vadd.f32 %v1389_v63, %v169_v24  ;;  %v244_v24 = vmax.f32 %v1411_v52, %v1396_v57 }
  0xdc   :  { %v1429_v7 = vadd.f32 %v1389_v63, %v167_v27  ;;  %v246_v27 = vmax.f32 %v1424_v20, %v1405_v56 }
  0xdd   :  { %v248_v45 = vmax.f32 %v244_v24, %v1417_v16  ;;  %v251_v46 = vmax.f32 %v247_v3, %v1420_v11 }
  0xde   :  { %v173_v28 = vpop.xlane.xlu1 %172 }
  0xdf   :  { %v171_v31 = vpop.xlane.xlu0 %170  ;;  %v1432_v8 = vadd.f32 %v1389_v63, %v173_v28  ;;  %v249_v28 = vmax.f32 %v245_v61, %v1408_v59  ;;  %v250_v61 = vmax.f32 %v246_v27, %v1429_v7 }
  0xe0   :  { %v1439_v4 = vadd.f32 %v1389_v63, %v171_v31 }
  0xe2   :  { %v177_v32 = vpop.xlane.xlu1 %176 }
  0xe3   :  { %v175_v35 = vpop.xlane.xlu0 %174  ;;  %v1442_v54 = vadd.f32 %v1389_v63, %v177_v32 }
  0xe4   :  { %v1448_v49 = vadd.f32 %v1389_v63, %v175_v35  ;;  %v253_v35 = vmax.f32 %v249_v28, %v1432_v8 }
  0xe5   :  { %v255_v24 = vmax.f32 %v251_v46, %v1442_v54 }
  0xe6   :  { %v181_v36 = vpop.xlane.xlu1 %180 }
  0xe7   :  { %v179_v1 = vpop.xlane.xlu0 %178  ;;  %v1453_v31 = vadd.f32 %v1389_v63, %v181_v36 }
  0xe8   :  { %v1456_v32 = vadd.f32 %v1389_v63, %v179_v1  ;;  %v252_v1 = vmax.f32 %v248_v45, %v1439_v4  ;;  %v890_v45 = vpack.c.bf16 %v494_v42, %v493_v41 }
  0xe9   :  { %v257_v46 = vmax.f32 %v253_v35, %v1453_v31 }
  0xea   :  { %v1376_v39 = vpop.xlane.xlu1 %184  ;;  %v256_v37 = vmax.f32 %v252_v1, %v1456_v32  ;;  %891 = vmatpush3.bf16.msra.mxu0 %v890_v45 }
  0xeb   :  { %v1378_v40 = vpop.xlane.xlu0 %182  ;;  %v1463_v53 = vadd.f32 %v1389_v63, %v1376_v39  ;;  %v254_v39 = vmax.f32 %v250_v61, %v1448_v49  ;;  %v495_v61 = vld [vmem:[#allocation6 + $0x50] sm:$0xff]  ;;  %892 = vmatprep.subr.bf16.mxu0 %v1751_v58 }
  0xec   :  { %v1467_v12 = vadd.f32 %v1389_v63, %v1378_v40 }
  0xed   :  { %v259_v38 = vmax.f32 %v255_v24, %v1463_v53 }
  0xee   :  { %v1380_v48 = vpop.xlane.xlu1 %188 }
  0xef   :  { %v1382_v51 = vpop.xlane.xlu0 %186  ;;  %v1473_v3 = vadd.f32 %v1389_v63, %v1380_v48 }
  0xf0   :  { %v1477_v27 = vadd.f32 %v1389_v63, %v1382_v51 }
  0xf1   :  { %v261_v35 = vmax.f32 %v257_v46, %v1473_v3  ;;  %v497_v46 = vld [vmem:[#allocation6 + $0x60] sm:$0xff] }
  0xf2   :  { %v193_v44 = vpop.xlane.xlu1 %192 }
  0xf3   :  { %v191_v62 = vpop.xlane.xlu0 %190  ;;  %v1481_v28 = vadd.f32 %v1389_v63, %v193_v44  ;;  %v496_v44 = vld [vmem:[#allocation6 + $0x58] sm:$0xff] }
  0xf4   :  { %v1484_v40 = vadd.f32 %v1389_v63, %v191_v62  ;;  %v258_v62 = vmax.f32 %v254_v39, %v1467_v12  ;;  %v893_v39 = vpack.c.bf16 %v496_v44, %v495_v61 }
  0xf5   :  { %v263_v24 = vmax.f32 %v259_v38, %v1481_v28 }
  0xf6   :  { %v197_v23 = vpop.xlane.xlu1 %196  ;;  %894 = vmatpush3.bf16.msra.mxu0 %v893_v39 }
  0xf7   :  { %v195_v60 = vpop.xlane.xlu0 %194  ;;  %v1489_v48 = vadd.f32 %v1389_v63, %v197_v23  ;;  %895 = vmatprep.subr.bf16.mxu0 %v1751_v58 }
  0xf8   :  { %v1492_v51 = vadd.f32 %v1389_v63, %v195_v60  ;;  %v260_v60 = vmax.f32 %v256_v37, %v1477_v27  ;;  %v498_v37 = vld [vmem:[#allocation6 + $0x68] sm:$0xff] }
  0xf9   :  { %v896_v44 = vpack.c.bf16 %v498_v37, %v497_v46 }
  0xfa   :  { %v201_v36 = vpop.xlane.xlu1 %200  ;;  %v264_v34 = vmax.f32 %v260_v60, %v1492_v51 }
  0xfb   :  { %v199_v19 = vpop.xlane.xlu0 %198  ;;  %v1498_v41 = vadd.f32 %v1389_v63, %v201_v36  ;;  %v262_v36 = vmax.f32 %v258_v62, %v1484_v40  ;;  %897 = vmatpush3.bf16.msra.mxu0 %v896_v44 }
  0xfc   :  { %v1501_v42 = vadd.f32 %v1389_v63, %v199_v19  ;;  %v265_v19 = vmax.f32 %v261_v35, %v1489_v48  ;;  %898 = vmatprep.subr.bf16.mxu0 %v1751_v58 }
  0xfd   :  { %1752 = vst [vmem:[#allocation31_spill] sm:$0xff] %v1498_v41 }
  0xfe   :  { %v205_v50 = vpop.xlane.xlu1 %204  ;;  %v266_v29 = vmax.f32 %v262_v36, %v1501_v42  ;;  %v500_v36 = vld [vmem:[#allocation6 + $0x78] sm:$0xff] }
  0xff   :  { %v203_v23 = vpop.xlane.xlu0 %202  ;;  %v1506_v1 = vadd.f32 %v1389_v63, %v205_v50  ;;  %v267_v50 = vmax.f32 %v263_v24, %v1498_v41  ;;  %v499_v24 = vld [vmem:[#allocation6 + $0x70] sm:$0xff] }
 0x100   :  { %v1509_v33 = vadd.f32 %v1389_v63, %v203_v23 }
 0x101   :  { %1753 = vst [vmem:[#allocation32_spill] sm:$0xff] %v1506_v1  ;;  %v269_v38 = vmax.f32 %v265_v19, %v1506_v1 }
 0x102   :  { %v209_v23 = vpop.xlane.xlu1 %208  ;;  %v268_v62 = vmax.f32 %v264_v34, %v1509_v33  ;;  %v899_v34 = vpack.c.bf16 %v500_v36, %v499_v24 }
 0x103   :  { %v207_v30 = vpop.xlane.xlu0 %206  ;;  %v1521_v45 = vadd.f32 %v1389_v63, %v209_v23 }
 0x104   :  { %v1524_v61 = vadd.f32 %v1389_v63, %v207_v30  ;;  %v272_v41 = vmax.f32 %v268_v62, %v269_v38  ;;  %900 = vmatpush3.bf16.msra.mxu0 %v899_v34 }
 0x105   :  { %v271_v35 = vmax.f32 %v267_v50, %v1521_v45 }
 0x106   :  { %v270_v60 = vmax.f32 %v266_v29, %v1524_v61 }
 0x108   :  { %v273_v19 = vmax.f32 %v270_v60, %v271_v35 }
 0x10a   :  { %v274_v1 = vmax.f32 %v272_v41, %v273_v19 }
 0x10c   :  { %v275_v23 = vrot.slane %v274_v1, 4 }
 0x10e   :  { %v276_v30 = vmax.f32 %v274_v1, %v275_v23 }
 0x110   :  { %v277_v63 = vrot.slane %v276_v30, 2 }
 0x112   :  { %v278_v39 = vmax.f32 %v276_v30, %v277_v63 }
 0x114   :  { %v279_v46 = vrot.slane %v278_v39, 1 }
 0x116   :  { %v1530_v37 = vmax.f32 %v278_v39, %v279_v46 }
 0x118   :  { %v281_v29 = vsub.f32 %v1411_v52, %v1530_v37  ;;  %v282_v50 = vsub.f32 %v1402_v55, %v1530_v37  ;;  %v283_v38 = vsub.f32 %v1424_v20, %v1530_v37  ;;  %v284_v41 = vsub.f32 %v1414_v15, %v1530_v37 }
 0x119   :  { %v285_v1 = vsub.f32 %v1396_v57, %v1530_v37  ;;  %v286_v60 = vsub.f32 %v1393_v43, %v1530_v37  ;;  %v287_v52 = vsub.f32 %v1405_v56, %v1530_v37  ;;  %v288_v15 = vsub.f32 %v1399_v47, %v1530_v37 }
 0x11a   :  { %v313_v62 = vmul.f32 1.442695, %v281_v29  ;;  %v315_v44 = vmul.f32 1.442695, %v282_v50  ;;  %v317_v35 = vmul.f32 1.442695, %v283_v38  ;;  %v289_v57 = vsub.f32 %v1417_v16, %v1530_v37 }
 0x11b   :  { %v319_v24 = vmul.f32 1.442695, %v284_v41  ;;  %v321_v55 = vmul.f32 1.442695, %v285_v1  ;;  %v323_v20 = vmul.f32 1.442695, %v286_v60  ;;  %v290_v43 = vsub.f32 %v1408_v59, %v1530_v37 }
 0x11c   :  { %934 = vpow2.f32 %v313_v62  ;;  %v325_v36 = vmul.f32 1.442695, %v287_v52  ;;  %v327_v19 = vmul.f32 1.442695, %v288_v15  ;;  %v291_v56 = vsub.f32 %v1429_v7, %v1530_v37 }
 0x11d   :  { %936 = vpow2.f32 %v315_v44  ;;  %v329_v34 = vmul.f32 1.442695, %v289_v57  ;;  %v292_v47 = vsub.f32 %v1420_v11, %v1530_v37  ;;  %v331_v63 = vmul.f32 1.442695, %v290_v43 }
 0x11e   :  { %938 = vpow2.f32 %v317_v35  ;;  %v293_v50 = vsub.f32 %v1439_v4, %v1530_v37  ;;  %v333_v7 = vmul.f32 1.442695, %v291_v56  ;;  %v294_v11 = vsub.f32 %v1432_v8, %v1530_v37 }
 0x11f   :  { %940 = vpow2.f32 %v319_v24  ;;  %v295_v4 = vsub.f32 %v1448_v49, %v1530_v37  ;;  %v296_v8 = vsub.f32 %v1442_v54, %v1530_v37  ;;  %v297_v49 = vsub.f32 %v1456_v32, %v1530_v37 }
 0x120   :  { %942 = vpow2.f32 %v321_v55  ;;  %v337_v24 = vmul.f32 1.442695, %v293_v50  ;;  %v298_v54 = vsub.f32 %v1453_v31, %v1530_v37  ;;  %v299_v32 = vsub.f32 %v1467_v12, %v1530_v37 }
 0x121   :  { %944 = vpow2.f32 %v323_v20  ;;  %v339_v20 = vmul.f32 1.442695, %v294_v11  ;;  %v300_v31 = vsub.f32 %v1463_v53, %v1530_v37  ;;  %v301_v12 = vsub.f32 %v1477_v27, %v1530_v37 }
 0x122   :  { %946 = vpow2.f32 %v325_v36  ;;  %v347_v50 = vmul.f32 1.442695, %v298_v54  ;;  %v302_v53 = vsub.f32 %v1473_v3, %v1530_v37  ;;  %v303_v27 = vsub.f32 %v1484_v40, %v1530_v37 }
 0x123   :  { %948 = vpow2.f32 %v327_v19  ;;  %v341_v19 = vmul.f32 1.442695, %v295_v4  ;;  %v353_v4 = vmul.f32 1.442695, %v301_v12  ;;  %v304_v3 = vsub.f32 %v1481_v28, %v1530_v37 }
 0x124   :  { %950 = vpow2.f32 %v329_v34  ;;  %v305_v40 = vsub.f32 %v1492_v51, %v1530_v37  ;;  %v306_v28 = vsub.f32 %v1489_v48, %v1530_v37  ;;  %v307_v51 = vsub.f32 %v1501_v42, %v1530_v37 }
 0x125   :  { %952 = vpow2.f32 %v331_v63  ;;  %v309_v42 = vsub.f32 %v1509_v33, %v1530_v37  ;;  %v311_v33 = vsub.f32 %v1524_v61, %v1530_v37 }
 0x126   :  { %v935_v23 = vpop.eup %934  ;;  %954 = vpow2.f32 %v333_v7  ;;  %v361_v54 = vmul.f32 1.442695, %v305_v40 }
 0x127   :  { %v937_v30 = vpop.eup %936  ;;  %v414_v16 = vmul.f32 %v935_v23, %v1250_v2  ;;  %v335_v2 = vmul.f32 1.442695, %v292_v47 }
 0x128   :  { %v939_v39 = vpop.eup %938  ;;  %v377_v46 = vadd.f32 %v937_v30, %v935_v23  ;;  %v415_v59 = vmul.f32 %v937_v30, %v1258_v6  ;;  %v343_v30 = vmul.f32 1.442695, %v296_v8 }
 0x129   :  { %v941_v29 = vpop.eup %940  ;;  %v416_v41 = vmul.f32 %v939_v39, %v1243_v0  ;;  %956 = vpow2.f32 %v335_v2 }
 0x12a   :  { %v378_v38 = vadd.f32 %v939_v39, %v377_v46  ;;  %v446_v1 = vadd.f32 %v415_v59, %v414_v16  ;;  %v943_v62 = vpop.eup %942  ;;  %v417_v35 = vmul.f32 %v941_v29, %v1256_v5  ;;  %958 = vpow2.f32 %v337_v24 }
 0x12b   :  { %v945_v60 = vpop.eup %944  ;;  %v418_v0 = vmul.f32 %v943_v62, %v1266_v10  ;;  %960 = vpow2.f32 %v339_v20  ;;  %v345_v39 = vmul.f32 1.442695, %v297_v49 }
 0x12c   :  { %v379_v44 = vadd.f32 %v941_v29, %v378_v38  ;;  %v447_v6 = vadd.f32 %v446_v1, %v416_v41  ;;  %v947_v15 = vpop.eup %946  ;;  %v419_v5 = vmul.f32 %v945_v60, %v1264_v9  ;;  %962 = vpow2.f32 %v341_v19 }
 0x12d   :  { %v949_v43 = vpop.eup %948  ;;  %v420_v10 = vmul.f32 %v947_v15, %v1274_v14  ;;  %964 = vpow2.f32 %v343_v30  ;;  %v349_v1 = vmul.f32 1.442695, %v299_v32  ;;  %v359_v19 = vmul.f32 1.442695, %v304_v3  ;;  %v1757_v32 = vld [vmem:[#allocation31_spill] sm:$0xff] }
 0x12e   :  { %v380_v52 = vadd.f32 %v943_v62, %v379_v44  ;;  %v448_v55 = vadd.f32 %v447_v6, %v417_v35  ;;  %v951_v23 = vpop.eup %950  ;;  %v421_v9 = vmul.f32 %v949_v43, %v1272_v13  ;;  %966 = vpow2.f32 %v345_v39  ;;  %v1763_v3 = vld [vmem:[#allocation19_spill] sm:$0xff] }
 0x12f   :  { %v953_v16 = vpop.eup %952  ;;  %v422_v14 = vmul.f32 %v951_v23, %v1282_v18  ;;  %968 = vpow2.f32 %v347_v50  ;;  %v351_v44 = vmul.f32 1.442695, %v300_v31  ;;  %v308_v48 = vsub.f32 %v1757_v32, %v1530_v37 }
 0x130   :  { %v381_v57 = vadd.f32 %v945_v60, %v380_v52  ;;  %v449_v36 = vadd.f32 %v448_v55, %v418_v0  ;;  %v955_v29 = vpop.eup %954  ;;  %v423_v13 = vmul.f32 %v953_v16, %v1280_v17  ;;  %970 = vpow2.f32 %v349_v1  ;;  %v1760_v1 = vld [vmem:[#allocation32_spill] sm:$0xff] }
 0x131   :  { %v424_v18 = vmul.f32 %v955_v29, %v1290_v22  ;;  %972 = vpow2.f32 %v351_v44  ;;  %v355_v55 = vmul.f32 1.442695, %v302_v53  ;;  %v363_v39 = vmul.f32 1.442695, %v306_v28 }
 0x132   :  { %v382_v56 = vadd.f32 %v947_v15, %v381_v57  ;;  %v450_v34 = vadd.f32 %v449_v36, %v419_v5  ;;  %974 = vpow2.f32 %v353_v4  ;;  %v357_v57 = vmul.f32 1.442695, %v303_v27  ;;  %v1754_v36 = vld [vmem:[#allocation14_spill] sm:$0xff] }
 0x133   :  { %v957_v41 = vpop.eup %956  ;;  %976 = vpow2.f32 %v355_v55  ;;  %v365_v50 = vmul.f32 1.442695, %v307_v51 }
 0x134   :  { %v383_v47 = vadd.f32 %v949_v43, %v382_v56  ;;  %v451_v63 = vadd.f32 %v450_v34, %v420_v10  ;;  %v959_v2 = vpop.eup %958  ;;  %v425_v17 = vmul.f32 %v957_v41, %v1288_v21  ;;  %v1755_v10 = vld [vmem:[#allocation13_spill] sm:$0xff]  ;;  %978 = vpow2.f32 %v357_v57 }
 0x135   :  { %v961_v60 = vpop.eup %960  ;;  %v426_v22 = vmul.f32 %v959_v2, %v1298_v26  ;;  %980 = vpow2.f32 %v359_v19  ;;  %v1766_v19 = vld [vmem:[#allocation24_spill] sm:$0xff] }
 0x136   :  { %v384_v46 = vadd.f32 %v951_v23, %v383_v47  ;;  %v452_v59 = vadd.f32 %v451_v63, %v421_v9  ;;  %v963_v0 = vpop.eup %962  ;;  %v427_v21 = vmul.f32 %v961_v60, %v1296_v25  ;;  %v1756_v47 = vld [vmem:[#allocation16_spill] sm:$0xff]  ;;  %982 = vpow2.f32 %v361_v54 }
 0x137   :  { %v965_v20 = vpop.eup %964  ;;  %v428_v26 = vmul.f32 %v963_v0, %v1754_v36  ;;  %984 = vpow2.f32 %v363_v39  ;;  %v1769_v39 = vld [vmem:[#allocation25_spill] sm:$0xff] }
 0x138   :  { %v385_v7 = vadd.f32 %v953_v16, %v384_v46  ;;  %v453_v38 = vadd.f32 %v452_v59, %v422_v14  ;;  %v967_v49 = vpop.eup %966  ;;  %v429_v25 = vmul.f32 %v965_v20, %v1755_v10  ;;  %v1758_v14 = vld [vmem:[#allocation15_spill] sm:$0xff]  ;;  %986 = vpow2.f32 %v365_v50 }
 0x139   :  { %v969_v23 = vpop.eup %968  ;;  %v430_v9 = vmul.f32 %v967_v49, %v1756_v47 }
 0x13a   :  { %v386_v62 = vadd.f32 %v955_v29, %v385_v7  ;;  %v454_v11 = vadd.f32 %v453_v38, %v423_v13  ;;  %v971_v16 = vpop.eup %970  ;;  %v431_v59 = vmul.f32 %v969_v23, %v1758_v14  ;;  %v1759_v13 = vld [vmem:[#allocation18_spill] sm:$0xff] }
 0x13b   :  { %v973_v31 = vpop.eup %972  ;;  %v432_v38 = vmul.f32 %v971_v16, %v1759_v13 }
 0x13c   :  { %v387_v35 = vadd.f32 %v957_v41, %v386_v62  ;;  %v455_v6 = vadd.f32 %v454_v11, %v424_v18  ;;  %v975_v12 = vpop.eup %974  ;;  %v310_v62 = vsub.f32 %v1760_v1, %v1530_v37  ;;  %v367_v18 = vmul.f32 1.442695, %v308_v48 }
 0x13e   :  { %v388_v24 = vadd.f32 %v959_v2, %v387_v35  ;;  %v456_v52 = vadd.f32 %v455_v6, %v425_v17  ;;  %v1761_v2 = vld [vmem:[#allocation17_spill] sm:$0xff]  ;;  %v977_v35 = vpop.eup %976  ;;  %v369_v17 = vmul.f32 1.442695, %v309_v42  ;;  %988 = vpow2.f32 %v367_v18  ;;  %v1772_v18 = vld [vmem:[#allocation30_spill] sm:$0xff] }
 0x13f   :  { %v433_v53 = vmul.f32 %v973_v31, %v1761_v2  ;;  %v435_v55 = vmul.f32 %v977_v35, %v1763_v3 }
 0x140   :  { %v389_v15 = vadd.f32 %v961_v60, %v388_v24  ;;  %v457_v8 = vadd.f32 %v456_v52, %v426_v22  ;;  %v1762_v60 = vld [vmem:[#allocation20_spill] sm:$0xff]  ;;  %v979_v24 = vpop.eup %978  ;;  %v312_v22 = vsub.f32 %v1521_v45, %v1530_v37  ;;  %v371_v52 = vmul.f32 1.442695, %v310_v62 }
 0x141   :  { %v434_v27 = vmul.f32 %v975_v12, %v1762_v60  ;;  %990 = vpow2.f32 %v369_v17 }
 0x142   :  { %v390_v5 = vadd.f32 %v963_v0, %v389_v15  ;;  %v458_v43 = vadd.f32 %v457_v8, %v427_v21  ;;  %v981_v21 = vpop.eup %980  ;;  %v373_v8 = vmul.f32 1.442695, %v311_v33  ;;  %992 = vpow2.f32 %v371_v52 }
 0x143   :  { %v375_v36 = vmul.f32 1.442695, %v312_v22 }
 0x144   :  { %v391_v56 = vadd.f32 %v965_v20, %v390_v5  ;;  %v459_v34 = vadd.f32 %v458_v43, %v428_v26  ;;  %v1764_v20 = vld [vmem:[#allocation22_spill] sm:$0xff]  ;;  %v983_v5 = vpop.eup %982  ;;  %v1765_v43 = vld [vmem:[#allocation21_spill] sm:$0xff]  ;;  %994 = vpow2.f32 %v373_v8 }
 0x145   :  { %v436_v40 = vmul.f32 %v979_v24, %v1764_v20  ;;  %v985_v37 = vpop.eup %984  ;;  %996 = vpow2.f32 %v375_v36  ;;  %v501_v20 = vld [vmem:[%s1705_s4] sm:$0x1] }
 0x146   :  { %v392_v30 = vadd.f32 %v967_v49, %v391_v56  ;;  %v460_v63 = vadd.f32 %v459_v34, %v429_v25  ;;  %v437_v49 = vmul.f32 %v981_v21, %v1765_v43  ;;  %v438_v56 = vmul.f32 %v983_v5, %v1766_v19  ;;  %v987_v25 = vpop.eup %986  ;;  %v593_v43 = vld [vmem:[#allocation8 + $0x8] sm:$0xff] }
 0x148   :  { %v393_v46 = vadd.f32 %v969_v23, %v392_v30  ;;  %v461_v29 = vadd.f32 %v460_v63, %v430_v9  ;;  %v1767_v23 = vld [vmem:[#allocation23_spill] sm:$0xff]  ;;  %v989_v30 = vpop.eup %988  ;;  %v1768_v9 = vld [vmem:[#allocation26_spill] sm:$0xff] }
 0x149   :  { %v439_v51 = vmul.f32 %v985_v37, %v1767_v23  ;;  %v440_v63 = vmul.f32 %v987_v25, %v1768_v9  ;;  %v596_v23 = vld [vmem:[#allocation8 + $0x20] sm:$0xff] }
 0x14a   :  { %v394_v7 = vadd.f32 %v971_v16, %v393_v46  ;;  %v462_v41 = vadd.f32 %v461_v29, %v431_v59  ;;  %v441_v46 = vmul.f32 %v989_v30, %v1769_v39  ;;  %v603_v39 = vld [vmem:[#allocation8 + $0x58] sm:$0xff] }
 0x14b   :  { %v991_v32 = vpop.eup %990 }
 0x14c   :  { %v395_v11 = vadd.f32 %v973_v31, %v394_v7  ;;  %v463_v44 = vadd.f32 %v462_v41, %v432_v38  ;;  %v993_v59 = vpop.eup %992  ;;  %v1770_v31 = vld [vmem:[#allocation28_spill] sm:$0xff]  ;;  %v1771_v38 = vld [vmem:[#allocation27_spill] sm:$0xff] }
 0x14d   :  { %v442_v42 = vmul.f32 %v991_v32, %v1770_v31  ;;  %v443_v41 = vmul.f32 %v993_v59, %v1771_v38  ;;  %v606_v31 = vld [vmem:[#allocation8 + $0x70] sm:$0xff] }
 0x14e   :  { %v396_v6 = vadd.f32 %v975_v12, %v395_v11  ;;  %v464_v4 = vadd.f32 %v463_v44, %v433_v53  ;;  %v995_v7 = vpop.eup %994  ;;  %v1773_v44 = vld [vmem:[#allocation29_spill] sm:$0xff] }
 0x14f   :  { %v997_v1 = vpop.eup %996  ;;  %v444_v11 = vmul.f32 %v995_v7, %v1772_v18 }
 0x150   :  { %v397_v0 = vadd.f32 %v977_v35, %v396_v6  ;;  %v465_v15 = vadd.f32 %v464_v4, %v434_v27  ;;  %v445_v35 = vmul.f32 %v997_v1, %v1773_v44 }
 0x152   :  { %v398_v61 = vadd.f32 %v979_v24, %v397_v0  ;;  %v466_v57 = vadd.f32 %v465_v15, %v435_v55 }
 0x154   :  { %v399_v26 = vadd.f32 %v981_v21, %v398_v61  ;;  %v467_v45 = vadd.f32 %v466_v57, %v436_v40 }
 0x156   :  { %v400_v28 = vadd.f32 %v983_v5, %v399_v26  ;;  %v468_v10 = vadd.f32 %v467_v45, %v437_v49  ;;  %v592_v26 = vld [vmem:[#allocation8] sm:$0xff]  ;;  %v594_v49 = vld [vmem:[#allocation8 + $0x10] sm:$0xff] }
 0x157   :  { %v902_v45 = vpack.c.bf16 %v593_v43, %v592_v26  ;;  %v1013_v43 = vld [vmem:[#allocation3 + $0x38] sm:$0xff] }
 0x158   :  { %v401_v34 = vadd.f32 %v985_v37, %v400_v28  ;;  %v469_v54 = vadd.f32 %v468_v10, %v438_v56  ;;  %v595_v37 = vld [vmem:[#allocation8 + $0x18] sm:$0xff] }
 0x159   :  { %903 = vmatpush3.bf16.msra.mxu1 %v902_v45  ;;  %v905_v28 = vpack.c.bf16 %v595_v37, %v594_v49  ;;  %v1014_v45 = vld [vmem:[#allocation3 + $0x40] sm:$0xff] }
 0x15a   :  { %v402_v47 = vadd.f32 %v987_v25, %v401_v34  ;;  %v470_v16 = vadd.f32 %v469_v54, %v439_v51  ;;  %904 = vmatprep.subr.bf16.mxu1 %v1751_v58  ;;  %v597_v51 = vld [vmem:[#allocation8 + $0x28] sm:$0xff]  ;;  %v598_v54 = vld [vmem:[#allocation8 + $0x30] sm:$0xff] }
 0x15c   :  { %v403_v48 = vadd.f32 %v989_v30, %v402_v47  ;;  %v471_v14 = vadd.f32 %v470_v16, %v440_v63  ;;  %v908_v30 = vpack.c.bf16 %v597_v51, %v596_v23  ;;  %v599_v47 = vld [vmem:[#allocation8 + $0x38] sm:$0xff]  ;;  %v600_v63 = vld [vmem:[#allocation8 + $0x40] sm:$0xff]  ;;  %v601_v16 = vld [vmem:[#allocation8 + $0x48] sm:$0xff] }
 0x15d   :  { %906 = vmatpush3.bf16.msra.mxu1 %v905_v28  ;;  %v911_v9 = vpack.c.bf16 %v599_v47, %v598_v54  ;;  %v1015_v28 = vld [vmem:[#allocation3 + $0x48] sm:$0xff]  ;;  %v1018_v23 = vld [vmem:[#allocation3 + $0x60] sm:$0xff]  ;;  %v1020_v47 = vld [vmem:[#allocation3 + $0x70] sm:$0xff] }
 0x15e   :  { %v404_v29 = vadd.f32 %v991_v32, %v403_v48  ;;  %v472_v50 = vadd.f32 %v471_v14, %v441_v46  ;;  %907 = vmatprep.subr.bf16.mxu1 %v1751_v58  ;;  %v914_v32 = vpack.c.bf16 %v601_v16, %v600_v63  ;;  %v602_v48 = vld [vmem:[#allocation8 + $0x50] sm:$0xff]  ;;  %v604_v14 = vld [vmem:[#allocation8 + $0x60] sm:$0xff]  ;;  %v1019_v54 = vld [vmem:[#allocation3 + $0x68] sm:$0xff] }
 0x15f   :  { %v917_v46 = vpack.c.bf16 %v603_v39, %v602_v48  ;;  %v1021_v63 = vld [vmem:[#allocation3 + $0x78] sm:$0xff]  ;;  %v1023_v39 = vld [vmem:[#allocation3 + $0x88] sm:$0xff] }
 0x160   :  { %v405_v13 = vadd.f32 %v993_v59, %v404_v29  ;;  %v473_v12 = vadd.f32 %v472_v50, %v442_v42  ;;  %v605_v59 = vld [vmem:[#allocation8 + $0x68] sm:$0xff]  ;;  %v607_v42 = vld [vmem:[#allocation8 + $0x78] sm:$0xff] }
 0x161   :  { %909 = vmatpush3.bf16.msra.mxu1 %v908_v30  ;;  %v920_v29 = vpack.c.bf16 %v605_v59, %v604_v14  ;;  %v923_v50 = vpack.c.bf16 %v607_v42, %v606_v31  ;;  %v1024_v14 = vld [vmem:[#allocation3 + $0x90] sm:$0xff]  ;;  %v1026_v42 = vld [vmem:[#allocation3 + $0xa0] sm:$0xff] }
 0x162   :  { %v406_v62 = vadd.f32 %v995_v7, %v405_v13  ;;  %v474_v2 = vadd.f32 %v473_v12, %v443_v41  ;;  %910 = vmatprep.subr.bf16.mxu1 %v1751_v58  ;;  %v587_v12 = vld [vmem:[%s1706_s5] sm:$0x1]  ;;  %s1140_s5 = smov [#allocation9]  }
 0x164   :  { %v407_v53 = vadd.f32 %v997_v1, %v406_v62  ;;  %v475_v33 = vadd.f32 %v474_v2, %v444_v11  ;;  %v589_v62 = vld [vmem:[%s1707_s6] sm:$0x1]  ;;  %s1671_s6 = sshll.u32 %s1140_s5, 4  ;;  %s759_s6 = int_to_ptr.vmem [resolvable:$true] %s1671_s6 }
 0x165   :  { %912 = vmatpush3.bf16.msra.mxu1 %v911_v9  ;;  %p1109_p11 = scmp.lt.s32.totalorder %s759_s6, %s759_s6 }
 0x166   :  { %v408_v17 = vrot.slane %v407_v53, 4  ;;  %v476_v6 = vadd.f32 %v475_v33, %v445_v35  ;;  %913 = vmatprep.subr.bf16.mxu1 %v1751_v58 }
 0x168   :  { %v409_v60 = vadd.f32 %v408_v17, %v407_v53  ;;  %v477_v27 = vrot.slane %v476_v6, 4 }
 0x169   :  { %915 = vmatpush3.bf16.msra.mxu1 %v914_v32  ;;  %v1022_v32 = vld [vmem:[#allocation3 + $0x80] sm:$0xff] }
 0x16a   :  { %v410_v4 = vrot.slane %v409_v60, 2  ;;  %v478_v24 = vadd.f32 %v477_v27, %v476_v6  ;;  %916 = vmatprep.subr.bf16.mxu1 %v1751_v58 }
 0x16c   :  { %v411_v22 = vadd.f32 %v410_v4, %v409_v60  ;;  %v479_v0 = vrot.slane %v478_v24, 2  ;;  %v685_v60 = vlaneseq }
 0x16d   :  { %918 = vmatpush3.bf16.msra.mxu1 %v917_v46 }
 0x16e   :  { %v412_v52 = vrot.slane %v411_v22, 1  ;;  %v480_v55 = vadd.f32 %v479_v0, %v478_v24  ;;  %919 = vmatprep.subr.bf16.mxu1 %v1751_v58  ;;  %v686_v27 = vshrl.u32 %v685_v60, 7 }
 0x170   :  { %v413_v3 = vadd.f32 %v412_v52, %v411_v22  ;;  %v481_v15 = vrot.slane %v480_v55, 1  ;;  %v687_v4 = vsub.s32 0, %v686_v27  ;;  %v1006_v52 = vld [vmem:[#allocation3] sm:$0xff]  ;;  %v1036_v27 = vld [vmem:[#allocation3 + $0xf0] sm:$0xff] }
 0x171   :  { %921 = vmatpush3.bf16.msra.mxu1 %v920_v29  ;;  %v1025_v29 = vld [vmem:[#allocation3 + $0x98] sm:$0xff] }
 0x172   :  { %998 = vrcp.f32 %v413_v3  ;;  %v482_v21 = vadd.f32 %v481_v15, %v480_v55  ;;  %922 = vmatprep.subr.bf16.mxu1 %v1751_v58  ;;  %v608_v58 = vld [vmem:[%s1709_s8] sm:$0x1]  ;;  %v1007_v3 = vld [vmem:[#allocation3 + $0x8] sm:$0xff]  ;;  %v1008_v15 = vld [vmem:[#allocation3 + $0x10] sm:$0xff]  ;;  %s1104_s8 = scalar_lea.vmem %s759_s6, 4096 }
 0x173   :  { %p1105_p10 = scmp.ne.s32.totalorder %s759_s6, %s1104_s8  ;;  %p1110_p12 = scmp.lt.s32.totalorder %s1104_s8, %s1104_s8 }
 0x175   :  { %924 = vmatpush3.bf16.msra.mxu1 %v923_v50  ;;  %p1111_p13 = por %p1110_p12, %p1109_p11 }
 0x177   :  { %p1112_p0 = pnand %p1111_p13, %p1105_p10 }
 0x17c   :  { %v999_v8 = vpop.eup %998 }
 0x17d   :  { %v484_v61 = vmul.f32 %v999_v8, %v482_v21  ;;  %v1009_v8 = vld [vmem:[#allocation3 + $0x18] sm:$0xff] }
 0x17f   :  { %840 = vmatmul.mubr.f32.vlgmr.msra.gmra.mrb[0].mxu0 %v484_v61 }
 0x252   :  { %v568_v40 = vpop.f32.mrb[0].mxu0 }
 0x253   :  { %v569_v57 = vadd.f32 %v568_v40, %v501_v20  ;;  %v841_v5 = vpop.f32.mrb[1].mxu0  ;;  %v1010_v20 = vld [vmem:[#allocation3 + $0x20] sm:$0xff] }
 0x255   :  { %v573_v36 = vsel %vm572_vm1, %v569_v57, 0.0 }
 0x256   :  { %574 = vadd.xlane.f32.xlu0 %v573_v36  ;;  %v1012_v36 = vld [vmem:[#allocation3 + $0x30] sm:$0xff] }
 0x2e3   :  { %v575_v19 = vpop.xlane.xlu0 %574 }
 0x2e4   :  { %v577_v56 = vmul.f32 0.0078125, %v575_v19 }
 0x2e6   :  { %v578_v10 = vsub.f32 %v569_v57, %v577_v56  ;;  %v1011_v57 = vld [vmem:[#allocation3 + $0x28] sm:$0xff]  ;;  %v1016_v56 = vld [vmem:[#allocation3 + $0x50] sm:$0xff] }
 0x2e8   :  { %v579_v25 = vmul.f32 %v578_v10, %v578_v10 }
 0x2ea   :  { %v580_v34 = vsel %vm572_vm1, %v579_v25, 0.0  ;;  %v1017_v25 = vld [vmem:[#allocation3 + $0x58] sm:$0xff] }
 0x2eb   :  { %581 = vadd.xlane.f32.xlu1 %v580_v34 }
 0x378   :  { %v582_v7 = vpop.xlane.xlu1 %581 }
 0x379   :  { %v583_v13 = vmul.f32 0.0078125, %v582_v7  ;;  %v1027_v7 = vld [vmem:[#allocation3 + $0xa8] sm:$0xff] }
 0x37b   :  { %v584_v38 = vadd.f32 1e-05, %v583_v13 }
 0x37d   :  { %1000 = vrsqrt.f32 %v584_v38  ;;  %v1028_v38 = vld [vmem:[#allocation3 + $0xb0] sm:$0xff] }
 0x387   :  { %v1001_v41 = vpop.eup %1000 }
 0x388   :  { %v586_v1 = vmul.f32 %v1001_v41, %v578_v10 }
 0x38a   :  { %v588_v18 = vmul.f32 %v587_v12, %v586_v1  ;;  %v1029_v12 = vld [vmem:[#allocation3 + $0xb8] sm:$0xff] }
 0x38c   :  { %v590_v11 = vadd.f32 %v589_v62, %v588_v18  ;;  %v1030_v62 = vld [vmem:[#allocation3 + $0xc0] sm:$0xff] }
 0x38e   :  { %v591_v2 = vmax.f32 %v590_v11, 0.0  ;;  %v1031_v11 = vld [vmem:[#allocation3 + $0xc8] sm:$0xff] }
 0x390   :  { %875 = vmatmul.mubr.f32.vlgmr.msra.gmra.mrb[0].mxu1 %v591_v2 }
 0x463   :  { %v675_v53 = vpop.f32.mrb[0].mxu1 }
 0x464   :  { %v676_v44 = vadd.f32 %v675_v53, %v608_v58  ;;  %v876_v35 = vpop.f32.mrb[1].mxu1  ;;  %v1032_v58 = vld [vmem:[#allocation3 + $0xd0] sm:$0xff] }
 0x466   :  { %v772_v33 = vmul.f32 -1.442695, %v676_v44  ;;  %v1033_v44 = vld [vmem:[#allocation3 + $0xd8] sm:$0xff] }
 0x468   :  { %1002 = vpow2.f32 %v772_v33  ;;  %v1034_v33 = vld [vmem:[#allocation3 + $0xe0] sm:$0xff] }
 0x472   :  { %v1003_v17 = vpop.eup %1002 }
 0x473   :  { %v682_v6 = vadd.f32 1.0, %v1003_v17 }
 0x475   :  { %1004 = vrcp.f32 %v682_v6  ;;  %v1035_v6 = vld [vmem:[#allocation3 + $0xe8] sm:$0xff] }
 0x47f   :  { %v1005_v24 = vpop.eup %1004 }
 0x480   :  { %v1649_v22 = vrot.slane %v1005_v24, %v687_v4  ;;  %v1037_v24 = vld [vmem:[#allocation3 + $0xf8] sm:$0xff] }
 0x482   :  { %v689_v0 = vmul.f32 %v1006_v52, %v1649_v22  ;;  %v690_v55 = vmul.f32 %v1007_v3, %v1649_v22  ;;  %v691_v21 = vmul.f32 %v1008_v15, %v1649_v22  ;;  %v692_v61 = vmul.f32 %v1009_v8, %v1649_v22 }
 0x483   :  { %v693_v40 = vmul.f32 %v1010_v20, %v1649_v22  ;;  %v694_v5 = vmul.f32 %v1011_v57, %v1649_v22  ;;  %v695_v26 = vmul.f32 %v1012_v36, %v1649_v22  ;;  %v696_v49 = vmul.f32 %v1013_v43, %v1649_v22 }
 0x484   :  { %v697_v37 = vmul.f32 %v1014_v45, %v1649_v22  ;;  %v698_v19 = vmul.f32 %v1015_v28, %v1649_v22  ;;  %v699_v10 = vmul.f32 %v1016_v56, %v1649_v22  ;;  %v700_v34 = vmul.f32 %v1017_v25, %v1649_v22  ;;  %721 = vst [vmem:[#allocation9] sm:$0xff] %v689_v0 }
 0x485   :  { %722 = vst [vmem:[#allocation9 + $0x8] sm:$0xff] %v690_v55  ;;  %723 = vst [vmem:[#allocation9 + $0x10] sm:$0xff] %v691_v21  ;;  %v701_v51 = vmul.f32 %v1018_v23, %v1649_v22  ;;  %v702_v30 = vmul.f32 %v1019_v54, %v1649_v22  ;;  %v703_v9 = vmul.f32 %v1020_v47, %v1649_v22 }
 0x486   :  { %724 = vst [vmem:[#allocation9 + $0x18] sm:$0xff] %v692_v61  ;;  %v704_v16 = vmul.f32 %v1021_v63, %v1649_v22  ;;  %725 = vst [vmem:[#allocation9 + $0x20] sm:$0xff] %v693_v40  ;;  %v705_v48 = vmul.f32 %v1022_v32, %v1649_v22  ;;  %v706_v46 = vmul.f32 %v1023_v39, %v1649_v22 }
 0x487   :  { %726 = vst [vmem:[#allocation9 + $0x28] sm:$0xff] %v694_v5  ;;  %727 = vst [vmem:[#allocation9 + $0x30] sm:$0xff] %v695_v26  ;;  %v707_v59 = vmul.f32 %v1024_v14, %v1649_v22  ;;  %v708_v31 = vmul.f32 %v1025_v29, %v1649_v22  ;;  %v709_v50 = vmul.f32 %v1026_v42, %v1649_v22 }
 0x488   :  { %728 = vst [vmem:[#allocation9 + $0x38] sm:$0xff] %v696_v49  ;;  %729 = vst [vmem:[#allocation9 + $0x40] sm:$0xff] %v697_v37  ;;  %v710_v13 = vmul.f32 %v1027_v7, %v1649_v22  ;;  %v711_v41 = vmul.f32 %v1028_v38, %v1649_v22  ;;  %v712_v1 = vmul.f32 %v1029_v12, %v1649_v22 }
 0x489   :  { %730 = vst [vmem:[#allocation9 + $0x48] sm:$0xff] %v698_v19  ;;  %731 = vst [vmem:[#allocation9 + $0x50] sm:$0xff] %v699_v10  ;;  %v713_v18 = vmul.f32 %v1030_v62, %v1649_v22  ;;  %v714_v2 = vmul.f32 %v1031_v11, %v1649_v22  ;;  %v715_v53 = vmul.f32 %v1032_v58, %v1649_v22 }
 0x48a   :  { %732 = vst [vmem:[#allocation9 + $0x58] sm:$0xff] %v700_v34  ;;  %733 = vst [vmem:[#allocation9 + $0x60] sm:$0xff] %v701_v51  ;;  %v716_v35 = vmul.f32 %v1033_v44, %v1649_v22  ;;  %v717_v17 = vmul.f32 %v1034_v33, %v1649_v22  ;;  %v718_v60 = vmul.f32 %v1035_v6, %v1649_v22 }
 0x48b   :  { %734 = vst [vmem:[#allocation9 + $0x68] sm:$0xff] %v702_v30  ;;  %735 = vst [vmem:[#allocation9 + $0x70] sm:$0xff] %v703_v9  ;;  %v719_v4 = vmul.f32 %v1036_v27, %v1649_v22  ;;  %v720_v52 = vmul.f32 %v1037_v24, %v1649_v22 }
 0x48c   :  { %736 = vst [vmem:[#allocation9 + $0x78] sm:$0xff] %v704_v16  ;;  %737 = vst [vmem:[#allocation9 + $0x80] sm:$0xff] %v705_v48 }
 0x48d   :  { %738 = vst [vmem:[#allocation9 + $0x88] sm:$0xff] %v706_v46  ;;  %739 = vst [vmem:[#allocation9 + $0x90] sm:$0xff] %v707_v59 }
 0x48e   :  { %740 = vst [vmem:[#allocation9 + $0x98] sm:$0xff] %v708_v31  ;;  %741 = vst [vmem:[#allocation9 + $0xa0] sm:$0xff] %v709_v50 }
 0x48f   :  { %742 = vst [vmem:[#allocation9 + $0xa8] sm:$0xff] %v710_v13  ;;  %743 = vst [vmem:[#allocation9 + $0xb0] sm:$0xff] %v711_v41 }
 0x490   :  { %744 = vst [vmem:[#allocation9 + $0xb8] sm:$0xff] %v712_v1  ;;  %745 = vst [vmem:[#allocation9 + $0xc0] sm:$0xff] %v713_v18 }
 0x491   :  { %746 = vst [vmem:[#allocation9 + $0xc8] sm:$0xff] %v714_v2  ;;  %747 = vst [vmem:[#allocation9 + $0xd0] sm:$0xff] %v715_v53 }
 0x492   :  { %748 = vst [vmem:[#allocation9 + $0xd8] sm:$0xff] %v716_v35  ;;  %749 = vst [vmem:[#allocation9 + $0xe0] sm:$0xff] %v717_v17 }
 0x493   :  { %750 = vst [vmem:[#allocation9 + $0xe8] sm:$0xff] %v718_v60  ;;  %751 = vst [vmem:[#allocation9 + $0xf0] sm:$0xff] %v719_v4 }
 0x494   :  { %752 = vst [vmem:[#allocation9 + $0xf8] sm:$0xff] %v720_v52 }
 0x495   :  { %1115 = shalt.err (!%p1112_p0)
}
 0x496   :  { %s1116_s15 = scalar_lea.hbm %s1710_s9, 4096 }
 0x497   :  { %p1117_p1 = scmp.ne.s32.totalorder %s1710_s9, %s1116_s15  ;;  %p1120_p2 = scmp.lt.u32.totalorder %s1116_s15, %s1710_s9 }
 0x499   :  { %p1122_p3 = pnand %p1120_p2, %p1117_p1 }
 0x49b   :  { %1125 = shalt.err (!%p1122_p3)
}
 0x49c   :  { %764 = dma.vmem_to_hbm [thread:$0]  %s759_s6, 4096, %s1710_s9, [#allocation5], %s1134_s21, %s1134_s21, %s1135_s22  }
 0x49d   :  { %1130 = dma.done.wait [#allocation5], 4096  }
 0x49e   :  { %1131 = vsyncadd [#allocation5], 4294963200 }
 0x49f   :  { %768 = vsyncpa [#allocation4], 1 }
 0x4a0   :  { %769 = vsyncpa [#allocation7], 1 }
 0x4a1   :  { %770 = vsyncpa [#allocation5], 1 }

</bundles_post_ra>
